<compile_context>
chip_gen: v7x
topology: tpu7x:2x2x1
jax: 0.10.0
libtpu: 0.0.40
codegen_flags: <defaults>
</compile_context>

<pallas_src>
import functools

import jax
import jax.numpy as jnp
from jax.experimental import pallas as pl
from jax.experimental.pallas import tpu as pltpu

_LANE = 128
_SUBLANE = 8
_MAX_UNROLL_SLABS = 32


def _round_up(x, m):
    return (x + m - 1) // m * m


def _grid_head_kernel(x_ref, w_ref, b_ref, o_ref, acc_ref, *, hw):
    # x_ref  : (TN, C, THW)   native dtype (f32 / bf16), streamed from HBM
    # w_ref  : (C, 8)         f32, pre-scaled by 1/HW (kernel computes sums)
    # b_ref  : (1, 8)         f32
    # o_ref  : (TN, 8)        f32, resident across the HW (reduction) grid axis
    # acc_ref: (TN, C, LANE)  f32 lane-preserving accumulator (scratch)
    j = pl.program_id(1)
    last_j = pl.num_programs(1) - 1

    tn, c, thw = x_ref.shape
    lane = acc_ref.shape[-1]
    nslab = thw // lane
    has_tail = (hw % thw) != 0        # static: only the last HW step has invalid lanes

    # Channel chunk size keeps each running register partial at <= ~8 f32 vregs.
    cc = max(1, min(c, _SUBLANE * max(1, 8 // max(tn, 1))))
    if c % cc != 0:
        cc = c                         # keep it simple when it does not divide evenly

    def make_load(c0, c1, masked):
        def load(k):
            idx = pl.multiple_of(k * lane, lane)
            s = x_ref[:, c0:c1, pl.ds(idx, lane)].astype(jnp.float32)
            if masked:
                pos = (j * thw + idx
                       + jax.lax.broadcasted_iota(jnp.int32, s.shape, 2))
                s = jnp.where(pos < hw, s, 0.0)
            return s
        return load

    def accumulate(masked):
        for c0 in range(0, c, cc):
            c1 = min(c, c0 + cc)
            load = make_load(c0, c1, masked)

            if nslab <= _MAX_UNROLL_SLABS:
                # Two independent add chains (a little ILP); partials stay in vregs.
                p0 = load(0)
                p1 = None
                for k in range(1, nslab):
                    if k % 2:
                        p1 = load(k) if p1 is None else p1 + load(k)
                    else:
                        p0 = p0 + load(k)
                partial = p0 if p1 is None else p0 + p1
            else:
                partial = jax.lax.fori_loop(1, nslab, lambda k, p: p + load(k),
                                            load(0), unroll=4)

            @pl.when(j == 0)
            def _():
                acc_ref[:, c0:c1, :] = partial     # first step: plain store, no RMW

            @pl.when(j != 0)
            def _():
                acc_ref[:, c0:c1, :] += partial

    if has_tail:
        @pl.when(j == last_j)
        def _():
            accumulate(True)

        @pl.when(j != last_j)
        def _():
            accumulate(False)
    else:
        accumulate(False)

    @pl.when(j == last_j)
    def _finalize():
        # The only cross-lane (XLU) reduce; runs once per N-tile, off the DMA path.
        pooled = jnp.sum(acc_ref[...], axis=-1)                       # (TN, C) spatial sums
        logits = jnp.dot(pooled, w_ref[...],
                         preferred_element_type=jnp.float32) + b_ref[...]
        m = jnp.max(logits, axis=-1, keepdims=True)
        shifted = logits - m
        lse = jnp.log(jnp.sum(jnp.exp(shifted), axis=-1, keepdims=True))
        o_ref[...] = (shifted - lse).astype(o_ref.dtype)


def _tile_vmem_bytes(tn, c, thw, dtype):
    # VMEM footprint of one (TN, C, THW) tile including sublane/lane padding.
    it = jnp.dtype(dtype).itemsize
    sub = max(_SUBLANE, 32 // it)                 # f32 -> 8, bf16 -> 16, int8 -> 32
    return tn * _round_up(c, sub) * _round_up(thw, _LANE) * it


def _vmem_plan():
    vmem_total = 64 << 20                          # conservative (v7x-class) fallback
    try:
        vmem_total = int(pltpu.get_tpu_info().vmem_capacity_bytes)
    except Exception:
        pass
    # Per-input-tile byte budget: v7x (64 MiB VMEM, 3.2 TB/s HBM) needs the largest
    # tiles it can fit; v5e/v6e are already near roofline around 8 MiB.
    budget = (12 << 20) if vmem_total <= (64 << 20) else (8 << 20)
    return budget, vmem_total


def _choose_tiles(n, c, hw, dtype, budget):
    # TN must be a multiple of 8 (output block rule) or equal the full batch.
    tns = [d for d in range(8, n + 1, 8) if n % d == 0] or [n]
    tn = tns[0]

    def tb(tn_, thw_):
        return _tile_vmem_bytes(tn_, c, thw_, dtype)

    small_hw = hw <= 4 * _LANE
    if (hw % _LANE == 0 or small_hw) and tb(tn, hw) <= budget:
        thw = hw                                   # whole spatial extent per step
        min_tile = tb(tns[0], hw)
        # Grow TN to fill the byte budget; keep >= 2 parallel N steps for the v7x
        # megacore unless the tile is tiny anyway.
        for cand in tns:
            if tb(cand, hw) > budget:
                break
            if (n // cand) >= 2 or min_tile < (2 << 20):
                tn = cand
    elif hw <= _LANE:
        thw = hw
    else:
        # Largest 128-multiple tile fitting the budget (>= one lane slab); the tail
        # (hw % thw) is masked in-kernel instead of padding in HBM.
        slab_bytes = tb(tn, _LANE)
        k = max(1, min(hw // _LANE, budget // max(1, slab_bytes)))
        thw = k * _LANE
    return tn, thw


def grid_head_forward(x, weight, bias, *, tile_budget_bytes=None):
    """x: (N, C, H, W); weight: (8, C) (Conv2d 1x1 weight squeezed); bias: (8,).
    Returns (N, 8, 1, 1) float32 log-probabilities."""
    n, c, h, w = x.shape
    hw = h * w

    x_flat = x.reshape(n, c, hw)                          # free reshape, native dtype
    w_t = weight.astype(jnp.float32).T / float(hw)        # (C, 8); fold 1/HW into W
    b_2d = bias.astype(jnp.float32).reshape(1, 8)

    budget, vmem_total = _vmem_plan()
    if tile_budget_bytes is not None:
        budget = tile_budget_bytes

    tn, thw = _choose_tiles(n, c, hw, x_flat.dtype, budget)
    lane = _LANE if thw % _LANE == 0 else thw
    grid = (n // tn, pl.cdiv(hw, thw))

    in_tile = _tile_vmem_bytes(tn, c, thw, x_flat.dtype)
    acc_bytes = tn * _round_up(c, _SUBLANE) * _round_up(lane, _LANE) * 4
    need = 2 * in_tile + acc_bytes + (2 << 20)            # dbl-buffered input + acc + slack
    vmem_limit = int(min(max(need, 32 << 20), vmem_total * 7 // 8))

    itemsize = jnp.dtype(x_flat.dtype).itemsize
    kernel = functools.partial(_grid_head_kernel, hw=hw)

    out = pl.pallas_call(
        kernel,
        out_shape=jax.ShapeDtypeStruct((n, 8), jnp.float32),
        grid_spec=pltpu.PrefetchScalarGridSpec(
            num_scalar_prefetch=0,
            grid=grid,
            in_specs=[
                pl.BlockSpec((tn, c, thw), lambda i, j: (i, 0, j)),   # streamed input
                pl.BlockSpec((c, 8), lambda i, j: (0, 0)),            # tiny, resident
                pl.BlockSpec((1, 8), lambda i, j: (0, 0)),            # bias
            ],
            out_specs=pl.BlockSpec((tn, 8), lambda i, j: (i, 0)),     # resident over HW
            scratch_shapes=[pltpu.VMEM((tn, c, lane), jnp.float32)],
        ),
        compiler_params=pltpu.CompilerParams(
            dimension_semantics=("parallel", "arbitrary"),
            vmem_limit_bytes=vmem_limit,
        ),
        cost_estimate=pl.CostEstimate(
            flops=n * c * hw + 2 * n * c * 8,
            transcendentals=n * 16,
            bytes_accessed=n * c * hw * itemsize + c * 8 * 4 + n * 8 * 4,
        ),
    )(x_flat, w_t, b_2d)

    return out.reshape(n, 8, 1, 1)


def _reference(x, weight, bias):
    pooled = jnp.mean(x.astype(jnp.float32), axis=(2, 3))               # (N, C)
    logits = pooled @ weight.astype(jnp.float32).T + bias.astype(jnp.float32)
    logits = logits - jax.scipy.special.logsumexp(logits, axis=1, keepdims=True)
    return logits.reshape(x.shape[0], 8, 1, 1)


if __name__ == "__main__":
    key = jax.random.PRNGKey(0)
    kx, kw, kb = jax.random.split(key, 3)

    # 1) Small shapes consistent with the module: ft_dim = 4, 16x16 feature map.
    N, C, H, W = 2, 4, 16, 16
    x = jax.random.normal(kx, (N, C, H, W), dtype=jnp.float32)
    weight = jax.random.normal(kw, (8, C), dtype=jnp.float32) * 0.1
    bias = jax.random.normal(kb, (8,), dtype=jnp.float32) * 0.1
    out = jax.block_until_ready(grid_head_forward(x, weight, bias))
    ref = _reference(x, weight, bias)
    assert out.shape == (N, 8, 1, 1)
    assert jnp.allclose(out, ref, atol=1e-4, rtol=1e-4)

    # 2) Non-128-multiple spatial extent + forced tiny tiles: exercises the cdiv
    #    grid, the multi-step accumulation and the in-kernel tail mask.
    k2 = jax.random.PRNGKey(1)
    kx2, kw2, kb2 = jax.random.split(k2, 3)
    N2, C2, H2, W2 = 4, 4, 23, 23
    x2 = jax.random.normal(kx2, (N2, C2, H2, W2), dtype=jnp.float32)
    w2 = jax.random.normal(kw2, (8, C2), dtype=jnp.float32) * 0.1
    b2 = jax.random.normal(kb2, (8,), dtype=jnp.float32) * 0.1
    out2 = jax.block_until_ready(grid_head_forward(x2, w2, b2, tile_budget_bytes=16 * 1024))
    ref2 = _reference(x2, w2, b2)
    assert jnp.allclose(out2, ref2, atol=1e-4, rtol=1e-4)

    # 3) Multi N-tile + multi HW-tile path (forced small budget).
    k3 = jax.random.PRNGKey(2)
    kx3, kw3, kb3 = jax.random.split(k3, 3)
    N3, C3, H3, W3 = 16, 4, 16, 16
    x3 = jax.random.normal(kx3, (N3, C3, H3, W3), dtype=jnp.float32)
    w3 = jax.random.normal(kw3, (8, C3), dtype=jnp.float32) * 0.1
    b3 = jax.random.normal(kb3, (8,), dtype=jnp.float32) * 0.1
    out3 = jax.block_until_ready(grid_head_forward(x3, w3, b3, tile_budget_bytes=32 * 1024))
    ref3 = _reference(x3, w3, b3)
    assert jnp.allclose(out3, ref3, atol=1e-4, rtol=1e-4)

    # 4) Larger, ragged spatial extent with default budget: many slabs (fori_loop
    #    path) + tail mask; bf16 streamed input with f32 accumulation.
    k4 = jax.random.PRNGKey(3)
    kx4, kw4, kb4 = jax.random.split(k4, 3)
    N4, C4, H4, W4 = 8, 4, 72, 72
    x4 = jax.random.normal(kx4, (N4, C4, H4, W4), dtype=jnp.float32).astype(jnp.bfloat16)
    w4 = jax.random.normal(kw4, (8, C4), dtype=jnp.float32) * 0.1
    b4 = jax.random.normal(kb4, (8,), dtype=jnp.float32) * 0.1
    out4 = jax.block_until_ready(grid_head_forward(x4, w4, b4))
    ref4 = _reference(x4, w4, b4)
    assert jnp.allclose(out4, ref4, atol=2e-2, rtol=2e-2)

    print("KERNEL_OK")
</pallas_src>

<mosaic_0001>
module attributes {stable_mosaic.version = 11 : i64} {
  func.func @_grid_head_kernel(%arg0: i32, %arg1: i32, %arg2: memref<2x4x256xf32, #tpu.memory_space<vmem>>, %arg3: memref<4x8xf32, #tpu.memory_space<vmem>>, %arg4: memref<1x8xf32, #tpu.memory_space<vmem>>, %arg5: memref<2x8xf32, #tpu.memory_space<vmem>>, %arg6: memref<2x4x128xf32, #tpu.memory_space<vmem>>) attributes {dimension_semantics = [#tpu.dimension_semantics<parallel>, #tpu.dimension_semantics<arbitrary>], iteration_bounds = array<i64: 1, 1>, scalar_prefetch = 0 : i64, scratch_operands = 1 : i64, tpu.core_type = #tpu.core_type<tc>, window_params = [{transform_indices = @transform_0, window_bounds = array<i64: 2, 4, 256>}, {pipeline_mode = #tpu.pipeline_mode<synchronous>, transform_indices = @transform_1, window_bounds = array<i64: 4, 8>}, {pipeline_mode = #tpu.pipeline_mode<synchronous>, transform_indices = @transform_2, window_bounds = array<i64: 1, 8>}, {transform_indices = @transform_3, window_bounds = array<i64: 2, 8>}]} {
    %c0_i32 = arith.constant 0 : i32
    %0 = tpu.assume_multiple %c0_i32, 128 : i32
    %c0 = arith.constant 0 : index
    %c0_0 = arith.constant 0 : index
    %1 = arith.index_cast %0 : i32 to index
    %2 = vector.load %arg2[%c0, %c0_0, %1] : memref<2x4x256xf32, #tpu.memory_space<vmem>>, vector<2x4x128xf32>
    %c128_i32 = arith.constant 128 : i32
    %3 = tpu.assume_multiple %c128_i32, 128 : i32
    %c0_1 = arith.constant 0 : index
    %c0_2 = arith.constant 0 : index
    %4 = arith.index_cast %3 : i32 to index
    %5 = vector.load %arg2[%c0_1, %c0_2, %4] : memref<2x4x256xf32, #tpu.memory_space<vmem>>, vector<2x4x128xf32>
    %6 = arith.addf %2, %5 : vector<2x4x128xf32>
    %c0_i32_3 = arith.constant 0 : i32
    %7 = arith.cmpi eq, %arg1, %c0_i32_3 : i32
    %8 = arith.extui %7 : i1 to i32
    %c0_i32_4 = arith.constant 0 : i32
    %9 = arith.cmpi ne, %8, %c0_i32_4 : i32
    scf.if %9 {
      %c0_9 = arith.constant 0 : index
      %c0_10 = arith.constant 0 : index
      %c0_11 = arith.constant 0 : index
      %16 = vector.load %arg6[%c0_9, %c0_10, %c0_11] : memref<2x4x128xf32, #tpu.memory_space<vmem>>, vector<2x4x128xf32>
      tpu.vector_store %arg6[%c0_9, %c0_10, %c0_11], %6 {strides = array<i32>} : memref<2x4x128xf32, #tpu.memory_space<vmem>>, vector<2x4x128xf32>,
    } else {
    }
    %c0_i32_5 = arith.constant 0 : i32
    %10 = arith.cmpi ne, %arg1, %c0_i32_5 : i32
    %11 = arith.extui %10 : i1 to i32
    %c0_i32_6 = arith.constant 0 : i32
    %12 = arith.cmpi ne, %11, %c0_i32_6 : i32
    scf.if %12 {
      %c0_9 = arith.constant 0 : index
      %c0_10 = arith.constant 0 : index
      %c0_11 = arith.constant 0 : index
      %16 = vector.load %arg6[%c0_9, %c0_10, %c0_11] : memref<2x4x128xf32, #tpu.memory_space<vmem>>, vector<2x4x128xf32>
      %17 = arith.addf %16, %6 : vector<2x4x128xf32>
      %c0_12 = arith.constant 0 : index
      %c0_13 = arith.constant 0 : index
      %c0_14 = arith.constant 0 : index
      %18 = vector.load %arg6[%c0_12, %c0_13, %c0_14] : memref<2x4x128xf32, #tpu.memory_space<vmem>>, vector<2x4x128xf32>
      tpu.vector_store %arg6[%c0_12, %c0_13, %c0_14], %17 {strides = array<i32>} : memref<2x4x128xf32, #tpu.memory_space<vmem>>, vector<2x4x128xf32>,
    } else {
    }
    %c0_i32_7 = arith.constant 0 : i32
    %13 = arith.cmpi eq, %arg1, %c0_i32_7 : i32
    %14 = arith.extui %13 : i1 to i32
    %c0_i32_8 = arith.constant 0 : i32
    %15 = arith.cmpi ne, %14, %c0_i32_8 : i32
    scf.if %15 {
      %c0_9 = arith.constant 0 : index
      %c0_10 = arith.constant 0 : index
      %c0_11 = arith.constant 0 : index
      %16 = vector.load %arg6[%c0_9, %c0_10, %c0_11] : memref<2x4x128xf32, #tpu.memory_space<vmem>>, vector<2x4x128xf32>
      %cst = arith.constant dense<0.000000e+00> : vector<2x4xf32>
      %17 = vector.multi_reduction <add>, %16, %cst [2] : vector<2x4x128xf32> to vector<2x4xf32>
      %c0_12 = arith.constant 0 : index
      %c0_13 = arith.constant 0 : index
      %18 = vector.load %arg3[%c0_12, %c0_13] : memref<4x8xf32, #tpu.memory_space<vmem>>, vector<4x8xf32>
      %cst_14 = arith.constant dense<0.000000e+00> : vector<2x8xf32>
      %19 = tpu.matmul %17, %18, %cst_14 {dimension_numbers = #tpu.dot_dimension_numbers<[1], [0], [0], [1], [0, 0, 1, 1], [], []>} : vector<2x4xf32>, vector<4x8xf32>, vector<2x8xf32> -> vector<2x8xf32>
      %c0_15 = arith.constant 0 : index
      %c0_16 = arith.constant 0 : index
      %20 = vector.load %arg4[%c0_15, %c0_16] : memref<1x8xf32, #tpu.memory_space<vmem>>, vector<1x8xf32>
      %21 = vector.broadcast %20 : vector<1x8xf32> to vector<2x8xf32>
      %22 = arith.addf %19, %21 : vector<2x8xf32>
      %cst_17 = arith.constant dense<0xFF800000> : vector<2xf32>
      %23 = vector.multi_reduction <maximumf>, %22, %cst_17 [1] : vector<2x8xf32> to vector<2xf32>
      %24 = vector.shape_cast %23 : vector<2xf32> to vector<2x1xf32>
      %25 = vector.broadcast %24 : vector<2x1xf32> to vector<2x8xf32>
      %26 = arith.subf %22, %25 : vector<2x8xf32>
      %27 = math.exp %26 : vector<2x8xf32>
      %cst_18 = arith.constant dense<0.000000e+00> : vector<2xf32>
      %28 = vector.multi_reduction <add>, %27, %cst_18 [1] : vector<2x8xf32> to vector<2xf32>
      %29 = vector.shape_cast %28 : vector<2xf32> to vector<2x1xf32>
      %30 = math.log %29 : vector<2x1xf32>
      %31 = vector.broadcast %30 : vector<2x1xf32> to vector<2x8xf32>
      %32 = arith.subf %26, %31 : vector<2x8xf32>
      %c0_19 = arith.constant 0 : index
      %c0_20 = arith.constant 0 : index
      %33 = vector.load %arg5[%c0_19, %c0_20] : memref<2x8xf32, #tpu.memory_space<vmem>>, vector<2x8xf32>
      tpu.vector_store %arg5[%c0_19, %c0_20], %32 {strides = array<i32>} : memref<2x8xf32, #tpu.memory_space<vmem>>, vector<2x8xf32>,
    } else {
    }
    return
  }
  func.func @transform_0(%arg0: i32, %arg1: i32) -> (i32, i32, i32) {
    %c0_i32 = arith.constant 0 : i32
    %c0_i32_0 = arith.constant 0 : i32
    return %arg0, %c0_i32, %arg1 : i32, i32, i32
  }
  func.func @transform_1(%arg0: i32, %arg1: i32) -> (i32, i32) {
    %c0_i32 = arith.constant 0 : i32
    %c0_i32_0 = arith.constant 0 : i32
    %c0_i32_1 = arith.constant 0 : i32
    return %c0_i32, %c0_i32_0 : i32, i32
  }
  func.func @transform_2(%arg0: i32, %arg1: i32) -> (i32, i32) {
    %c0_i32 = arith.constant 0 : i32
    %c0_i32_0 = arith.constant 0 : i32
    %c0_i32_1 = arith.constant 0 : i32
    return %c0_i32, %c0_i32_0 : i32, i32
  }
  func.func @transform_3(%arg0: i32, %arg1: i32) -> (i32, i32) {
    %c0_i32 = arith.constant 0 : i32
    %c0_i32_0 = arith.constant 0 : i32
    return %arg0, %c0_i32 : i32, i32
  }
}

</mosaic_0001>

<bundles_post_ra>
// kernel: tpu_custom_call.1
= control target key start
LH: loop header
LB: loop body
LE: loop exit
PB: predicated region body
PF: predicated region fallthrough
CT: control target
= control target key end

     0   :  { %8 = vsyncpa [#allocation4], 0  ;;  %s366_s0 = inlined_call_operand.hbm [shape: f32[2,4,256], index: 0, kind: input, shape index: {}]   ;;  %s367_s1 = inlined_call_operand.hbm [shape: f32[4,8], index: 1, kind: input, shape index: {}]   ;;  %s368_s2 = inlined_call_operand.vmem [shape: f32[1,8], index: 2, kind: input, shape index: {}]   ;;  %s369_s3 = inlined_call_operand.hbm [shape: f32[2,8], index: 3, kind: output, shape index: {}]  }
   0x1   :  { %9 = vsyncpa [#allocation7], 0 }
   0x2   :  { %10 = vsyncpa [#allocation5], 0  ;;  %s297_s12 = smov [#allocation3]   ;;  %s225_s16 = scalar_lea.hbm %s366_s0, 256 }
   0x3   :  { %s16_s13 = sshll.u32 %s297_s12, 4  ;;  %p226_p0 = scmp.ne.s32.totalorder %s366_s0, %s225_s16  ;;  %s17_s13 = int_to_ptr.vmem [resolvable:$true] %s16_s13 }
   0x4   :  { %p229_p1 = scmp.lt.u32.totalorder %s225_s16, %s366_s0 }
   0x6   :  { %p231_p2 = pnand %p229_p1, %p226_p0 }
   0x8   :  { %234 = shalt.err (!%p231_p2)
}
   0x9   :  { %s235_s21 = scalar_lea.vmem %s17_s13, 256  ;;  %p240_p4 = scmp.lt.s32.totalorder %s17_s13, %s17_s13 }
   0xa   :  { %p236_p3 = scmp.ne.s32.totalorder %s17_s13, %s235_s21  ;;  %p241_p5 = scmp.lt.s32.totalorder %s235_s21, %s235_s21 }
   0xc   :  { %p242_p6 = por %p241_p5, %p240_p4 }
   0xe   :  { %p243_p7 = pnand %p242_p6, %p236_p3 }
  0x10   :  { %246 = shalt.err (!%p243_p7)
}
  0x11   :  { %s298_s22 = smov 128   ;;  %s299_s23 = smov 8  }
  0x12   :  { %22 = dma.hbm_to_vmem [thread:$0]  %s366_s0, 256, %s17_s13, [#allocation4], %s298_s22, %s298_s22, %s299_s23  }
  0x13   :  { %s300_s26 = smov [#allocation6]   ;;  %s247_s30 = scalar_lea.hbm %s367_s1, 64 }
  0x14   :  { %s29_s27 = sshll.u32 %s300_s26, 4  ;;  %p248_p8 = scmp.ne.s32.totalorder %s367_s1, %s247_s30  ;;  %s30_s27 = int_to_ptr.vmem [resolvable:$true] %s29_s27 }
  0x15   :  { %p251_p9 = scmp.lt.u32.totalorder %s247_s30, %s367_s1 }
  0x17   :  { %p253_p10 = pnand %p251_p9, %p248_p8 }
  0x19   :  { %256 = shalt.err (!%p253_p10)
}
  0x1a   :  { %s257_s8 = scalar_lea.vmem %s30_s27, 64  ;;  %p262_p12 = scmp.lt.s32.totalorder %s30_s27, %s30_s27 }
  0x1b   :  { %p258_p11 = scmp.ne.s32.totalorder %s30_s27, %s257_s8  ;;  %p263_p13 = scmp.lt.s32.totalorder %s257_s8, %s257_s8 }
  0x1d   :  { %p264_p0 = por %p263_p13, %p262_p12 }
  0x1f   :  { %p265_p1 = pnand %p264_p0, %p258_p11 }
  0x21   :  { %268 = shalt.err (!%p265_p1)
}
  0x22   :  { %32 = dma.hbm_to_vmem [thread:$0]  %s367_s1, 64, %s30_s27, [#allocation7]  }
  0x23   :  { %291 = dma.done.wait [#allocation4], 256  }
  0x24   :  { %292 = vsyncadd [#allocation4], 4294967040 }
  0x25   :  { %293 = dma.done.wait [#allocation7], 64  }
  0x26   :  { %294 = vsyncadd [#allocation7], 4294967232  ;;  %v41_v0 = vld [vmem:[#allocation3] sm:$0xf]  ;;  %v44_v1 = vld [vmem:[#allocation3 + $0x4] sm:$0xf]  ;;  %v86_v12 = vlaneseq }
  0x27   :  { %v42_v2 = vld [vmem:[#allocation3 + $0x8] sm:$0xf]  ;;  %v46_v3 = vadd.f32 %v44_v1, %v41_v0  ;;  %v45_v4 = vld [vmem:[#allocation3 + $0xc] sm:$0xf]  ;;  %vm69_vm0 = vcmask 1043456   ;;  %v301_v11 = vmov 0.0  }
  0x28   :  { %v47_v5 = vadd.f32 %v45_v4, %v42_v2  ;;  %v76_v10 = vld [vmem:[#allocation6] sm:$0xf]  ;;  %209 = vmatprep.subr.mxu0 %v301_v11  ;;  %vm302_vm1 = vmmov 0   ;;  %v87_v13 = vand.u32 127, %v86_v12  ;;  %v89_v14 = vshrl.u32 %v86_v12, 7  ;;  %s303_s11 = smov [#allocation8]  }
  0x29   :  { %52 = vst [vmem:[#allocation2] sm:$0xf] %v46_v3  ;;  %211 = vmatprep.mubr.msk.f32.mxu0 %vm302_vm1, %v301_v11  ;;  %210 = vmatpush3.msk.msra.mxu0 %vm69_vm0, %v76_v10  ;;  %vm96_vm2 = vcmask 1041409   ;;  %vm98_vm3 = vcmask 31744   ;;  %v204_v21 = vld [vmem:[%s368_s2] ss:$0 sm:$0xff] }
  0x2a   :  { %53 = vst [vmem:[#allocation2 + $0x4] sm:$0xf] %v47_v5  ;;  %v90_v16 = vsub.s32 %v87_v13, %v89_v14  ;;  %vm174_vm4 = vcmask 58368   ;;  %s194_s2 = sshll.u32 %s303_s11, 4  ;;  %s195_s2 = int_to_ptr.vmem [resolvable:$true] %s194_s2 }
  0x2b   :  { %s269_s12 = scalar_lea.vmem %s195_s2, 32  ;;  %p274_p3 = scmp.lt.s32.totalorder %s195_s2, %s195_s2 }
  0x2c   :  { %p270_p2 = scmp.ne.s32.totalorder %s195_s2, %s269_s12  ;;  %p275_p4 = scmp.lt.s32.totalorder %s269_s12, %s269_s12 }
  0x2e   :  { %p276_p5 = por %p275_p4, %p274_p3 }
  0x30   :  { %v67_v6 = vld [vmem:[#allocation2] sm:$0xf]  ;;  %p277_p6 = pnand %p276_p5, %p270_p2 }
  0x31   :  { %v70_v7 = vsel %vm69_vm0, %v67_v6, 0.0  ;;  %v68_v8 = vld [vmem:[#allocation2 + $0x4] sm:$0xf] }
  0x32   :  { %71 = vadd.xlane.f32.xlu0 %v70_v7  ;;  %v73_v9 = vsel %vm69_vm0, %v68_v8, 0.0 }
  0x36   :  { %74 = vadd.xlane.f32.xlu0 %v73_v9 }
  0xbf   :  { %v72_v15 = vpop.xlane.xlu0 %71 }
  0xc0   :  { %v91_v18 = vrot.slane %v72_v15, %v90_v16 }
  0xc3   :  { %v75_v17 = vpop.xlane.xlu0 %74 }
  0xc4   :  { %v95_v19 = vrot.slane %v75_v17, %v90_v16 }
  0xc6   :  { %v97_v20 = vsel %vm96_vm2, %v95_v19, %v91_v18 }
  0xc7   :  { %212 = vmatmul.mubr.msk.f32.vlgmr.msra.gmra.mrb[0].mxu0 %vm98_vm3, %v97_v20 }
 0x19a   :  { %v170_v22 = vpop.f32.mrb[0].mxu0 }
 0x19b   :  { %v171_v23 = vadd.f32 %v204_v21, %v170_v22  ;;  %v213_v24 = vpop.f32.mrb[1].mxu0 }
 0x19d   :  { %v175_v25 = vsel %vm174_vm4, %v171_v23, -inf }
 0x19e   :  { %176 = vmax.xlane.f32.xlu1 %v175_v25 }
 0x22b   :  { %v177_v26 = vpop.xlane.xlu1 %176 }
 0x22c   :  { %v178_v27 = vsub.f32 %v171_v23, %v177_v26 }
 0x22e   :  { %v179_v28 = vmul.f32 1.442695, %v178_v27 }
 0x230   :  { %221 = vpow2.f32 %v179_v28 }
 0x23a   :  { %v222_v29 = vpop.eup %221 }
 0x23b   :  { %v181_v30 = vsel %vm174_vm4, %v222_v29, 0.0 }
 0x23c   :  { %182 = vadd.xlane.f32.xlu1 %v181_v30 }
 0x2c9   :  { %v183_v31 = vpop.xlane.xlu1 %182 }
 0x2ca   :  { %223 = vlog2.f32 %v183_v31 }
 0x2d4   :  { %v224_v32 = vpop.eup %223 }
 0x2d5   :  { %v185_v33 = vmul.f32 0.6931472, %v224_v32 }
 0x2d7   :  { %v186_v34 = vsub.f32 %v178_v27, %v185_v33 }
 0x2d9   :  { %187 = vst.msk [vmem:[#allocation8] sm:$0x3] %vm174_vm4, %v186_v34 }
 0x2da   :  { %280 = shalt.err (!%p277_p6)
}
 0x2db   :  { %s281_s15 = scalar_lea.hbm %s369_s3, 32 }
 0x2dc   :  { %p282_p7 = scmp.ne.s32.totalorder %s369_s3, %s281_s15  ;;  %p285_p8 = scmp.lt.u32.totalorder %s281_s15, %s369_s3 }
 0x2de   :  { %p287_p9 = pnand %p285_p8, %p282_p7 }
 0x2e0   :  { %290 = shalt.err (!%p287_p9)
}
 0x2e1   :  { %197 = dma.vmem_to_hbm [thread:$0]  %s195_s2, 32, %s369_s3, [#allocation5]  }
 0x2e2   :  { %295 = dma.done.wait [#allocation5], 32  }
 0x2e3   :  { %296 = vsyncadd [#allocation5], 4294967264 }
 0x2e4   :  { %201 = vsyncpa [#allocation4], 1 }
 0x2e5   :  { %202 = vsyncpa [#allocation7], 1 }
 0x2e6   :  { %203 = vsyncpa [#allocation5], 1 }

</bundles_post_ra>
